<compile_context>
chip_gen: v7x
topology: tpu7x:2x2x1
jax: 0.10.0
libtpu: 0.0.40
codegen_flags: <defaults>
</compile_context>

<pallas_src>
import jax
import jax.numpy as jnp
from jax.experimental import pallas as pl
from jax.experimental.pallas import tpu as pltpu


def _round_up(x, m):
    return (x + m - 1) // m * m


def _vmem_budget_bytes():
    """~75% of per-TensorCore VMEM; falls back to the v7x-safe 64 MiB figure."""
    cap = 64 * 2**20
    try:
        info = pltpu.get_tpu_info()
        cap = int(getattr(info, "vmem_capacity_bytes", cap))
    except Exception:
        pass
    cap = min(max(cap, 32 * 2**20), 128 * 2**20)
    return cap * 3 // 4


def _select_tiles(N, D, V, tile_rows, tile_vocab, op_bytes, budget):
    """Pick (TM, TV) sized against the actual VMEM budget: TV first, then TM."""
    # 1) Vocab tile: bounded by the double-buffered (D, TV) weight block.
    w_budget = budget * 3 // 10
    max_tv = max(128, (w_budget // (2 * D * op_bytes)) // 128 * 128)
    tv_req = max(128, _round_up(tile_vocab, 128))
    TV = max(128, min(tv_req, max_tv, _round_up(V, 128)))
    Vp = _round_up(V, TV)

    # 2) Row tile: bounded by what is left after weight/bias buffers.
    #    Per row: x double-buffer (2*D*op_bytes) + f32 logits double-buffer
    #    (8*TV) + lse/scratch (~24 B).
    rem = budget - 2 * D * TV * op_bytes - 2 * TV * 4
    per_row = 2 * D * op_bytes + 8 * TV + 24
    max_tm = max(8, (rem // per_row) // 8 * 8)
    tm_req = max(8, _round_up(tile_rows, 8))
    TM = min(tm_req, max_tm)
    if TM >= N:
        TM = _round_up(N, 8)          # single row tile covers everything
    elif TM >= 256:
        TM = (TM // 256) * 256        # full MXU occupancy on v6e/v7x
    TM = max(8, (TM // 8) * 8)
    Np = _round_up(N, TM)
    return TM, TV, Np, Vp


def _logits_lse_kernel(x_ref, w_ref, b_ref, logits_ref, lse_ref, m_ref, l_ref):
    # x_ref:      (TM, D)  operand-dtype row tile, resident across the vocab axis
    # w_ref:      (D, TV)  operand-dtype streamed weight tile
    # b_ref:      (1, TV)  f32 streamed bias tile
    # logits_ref: (TM, TV) f32 raw-logit output tile (streamed, lane-dense)
    # lse_ref:    (TM, 1)  f32 per-row logsumexp (written on last vocab tile)
    # m_ref/l_ref:(TM, 1)  f32 running max / running sum-of-exp scratch
    j = pl.program_id(1)

    @pl.when(j == 0)
    def _init():
        m_ref[...] = jnp.full_like(m_ref, -jnp.inf)
        l_ref[...] = jnp.zeros_like(l_ref)

    logits = jnp.dot(x_ref[...], w_ref[...],
                     preferred_element_type=jnp.float32) + b_ref[...]

    # Online logsumexp over vocab tiles (numerically stable).
    m_prev = m_ref[...]
    m_new = jnp.maximum(m_prev, jnp.max(logits, axis=-1, keepdims=True))
    alpha = jnp.exp(m_prev - m_new)
    l_ref[...] = alpha * l_ref[...] + jnp.sum(jnp.exp(logits - m_new),
                                              axis=-1, keepdims=True)
    m_ref[...] = m_new

    # Raw logits streamed out per (i, j) tile; normalization happens in pass 2.
    logits_ref[...] = logits

    @pl.when(j == pl.num_programs(1) - 1)
    def _finalize():
        lse_ref[...] = m_ref[...] + jnp.log(l_ref[...])


def _normalize_kernel(logits_ref, lse_ref, o_ref):
    # logits_ref: (TM, TV) f32; lse_ref: (TM, 1) f32; o_ref: (TM, TV) out_dtype
    o_ref[...] = (logits_ref[...] - lse_ref[...]).astype(o_ref.dtype)


def nlu_head_forward(encoder_output, weight_t, bias, *,
                     tile_rows=512, tile_vocab=2048,
                     operand_dtype=jnp.bfloat16, out_dtype=None):
    """LogSoftmax(encoder_output @ weight_t + bias) over the vocab dimension.

    encoder_output: (B, S, D); weight_t: (D, V) (transposed nn.Linear weight);
    bias: (V,).  Returns (B, S, V) log-probabilities (out_dtype defaults to
    encoder_output.dtype).  operand_dtype controls the MXU input precision
    (bf16 by default, f32 accumulation; pass jnp.float32 for exact module
    numerics).
    """
    B, S, D = encoder_output.shape
    V = weight_t.shape[1]
    N = B * S
    out_dtype = encoder_output.dtype if out_dtype is None else out_dtype
    op_bytes = jnp.dtype(operand_dtype).itemsize
    out_bytes = jnp.dtype(out_dtype).itemsize

    budget = _vmem_budget_bytes()
    TM, TV, Np, Vp = _select_tiles(N, D, V, tile_rows, tile_vocab, op_bytes,
                                   budget)
    row_tiles, vocab_tiles = Np // TM, Vp // TV

    # ---- Pad & cast operands -------------------------------------------------
    x2d = encoder_output.reshape(N, D).astype(operand_dtype)
    if Np != N:
        x2d = jnp.pad(x2d, ((0, Np - N), (0, 0)))           # zero rows: harmless
    w_p = weight_t.astype(operand_dtype)
    b_p = bias.astype(jnp.float32)
    if Vp != V:
        w_p = jnp.pad(w_p, ((0, 0), (0, Vp - V)))
        # Finite, very negative bias on padded vocab lanes: exp underflows to 0
        # and the running max stays finite (never use -inf here).
        b_p = jnp.pad(b_p, (0, Vp - V), constant_values=-1e30)
    b2d = b_p.reshape(1, Vp)

    # ---- VMEM limits / cost estimates ---------------------------------------
    est1 = (2 * TM * D * op_bytes + 2 * D * TV * op_bytes + 2 * TV * 4
            + 2 * TM * TV * 4 + 4 * TM * 4)
    vmem1 = int(min(max(est1 * 5 // 4 + (4 << 20), 32 << 20), budget))
    est2 = 2 * TM * TV * (4 + out_bytes) + 4 * TM * 4
    vmem2 = int(min(max(est2 * 5 // 4 + (4 << 20), 32 << 20), budget))

    cost1 = pl.CostEstimate(
        flops=2 * Np * D * Vp,
        transcendentals=Np * Vp,
        bytes_accessed=(Np * D * op_bytes + row_tiles * D * Vp * op_bytes
                        + row_tiles * Vp * 4 + Np * Vp * 4 + Np * 4),
    )
    cost2 = pl.CostEstimate(
        flops=Np * Vp,
        transcendentals=0,
        bytes_accessed=Np * Vp * 4 + Np * 4 + Np * Vp * out_bytes,
    )

    # ---- Pass 1: matmul + online logsumexp -----------------------------------
    logits2d, lse2d = pl.pallas_call(
        _logits_lse_kernel,
        out_shape=(jax.ShapeDtypeStruct((Np, Vp), jnp.float32),
                   jax.ShapeDtypeStruct((Np, 1), jnp.float32)),
        grid_spec=pltpu.PrefetchScalarGridSpec(
            num_scalar_prefetch=0,
            grid=(row_tiles, vocab_tiles),              # vocab (reduction) last
            in_specs=[
                pl.BlockSpec((TM, D), lambda i, j: (i, 0)),   # x: resident over j
                pl.BlockSpec((D, TV), lambda i, j: (0, j)),   # weight: streamed
                pl.BlockSpec((1, TV), lambda i, j: (0, j)),   # bias: streamed
            ],
            out_specs=[
                pl.BlockSpec((TM, TV), lambda i, j: (i, j)),  # raw logits tile
                pl.BlockSpec((TM, 1), lambda i, j: (i, 0)),   # per-row lse
            ],
            scratch_shapes=[pltpu.VMEM((TM, 1), jnp.float32),   # running max
                            pltpu.VMEM((TM, 1), jnp.float32)],  # running sum
        ),
        compiler_params=pltpu.CompilerParams(
            dimension_semantics=("parallel", "arbitrary"),
            vmem_limit_bytes=vmem1,
        ),
        cost_estimate=cost1,
    )(x2d, w_p, b2d)

    # ---- Pass 2: subtract logsumexp (cheap, lane-dense elementwise) ----------
    out2d = pl.pallas_call(
        _normalize_kernel,
        out_shape=jax.ShapeDtypeStruct((Np, Vp), out_dtype),
        grid_spec=pltpu.PrefetchScalarGridSpec(
            num_scalar_prefetch=0,
            grid=(row_tiles, vocab_tiles),
            in_specs=[
                pl.BlockSpec((TM, TV), lambda i, j: (i, j)),
                pl.BlockSpec((TM, 1), lambda i, j: (i, 0)),
            ],
            out_specs=pl.BlockSpec((TM, TV), lambda i, j: (i, j)),
        ),
        compiler_params=pltpu.CompilerParams(
            dimension_semantics=("parallel", "parallel"),
            vmem_limit_bytes=vmem2,
        ),
        cost_estimate=cost2,
    )(logits2d, lse2d)

    return out2d[:N, :V].reshape(B, S, V)


def _reference(x, w_t, b, operand_dtype=None):
    """Pure-JAX reference; optionally with matched (bf16) operand precision."""
    B, S, D = x.shape
    V = w_t.shape[1]
    if operand_dtype is not None:
        x = x.astype(operand_dtype)
        w_t = w_t.astype(operand_dtype)
    logits = jnp.dot(x.reshape(B * S, D), w_t,
                     preferred_element_type=jnp.float32).reshape(B, S, V) + b
    return jax.nn.log_softmax(logits, axis=-1)


def _make_inputs(key, batch, seq, model_dim, vocab_size):
    k_x, k_w, k_b = jax.random.split(key, 3)
    bound = 1.0 / (model_dim ** 0.5)
    x = jax.random.normal(k_x, (batch, seq, model_dim), jnp.float32)
    w_t = jax.random.uniform(k_w, (model_dim, vocab_size), jnp.float32,
                             minval=-bound, maxval=bound)
    b = jax.random.uniform(k_b, (vocab_size,), jnp.float32,
                           minval=-bound, maxval=bound)
    return x, w_t, b


if __name__ == "__main__":
    root = jax.random.PRNGKey(0)
    k1, k2, k3 = jax.random.split(root, 3)

    # Case 1: f32-operand path reproduces the PyTorch module's numerics exactly.
    x, w_t, b = _make_inputs(k1, 2, 8, 32, 128)
    out = jax.block_until_ready(
        nlu_head_forward(x, w_t, b, operand_dtype=jnp.float32))
    ref = _reference(x, w_t, b)
    assert out.shape == (2, 8, 128)
    assert jnp.allclose(out, ref, atol=1e-4, rtol=1e-4)

    # Case 2: default bf16-operand path, ragged shapes (row + vocab padding).
    x, w_t, b = _make_inputs(k2, 3, 5, 48, 200)
    out = jax.block_until_ready(nlu_head_forward(x, w_t, b))
    ref_matched = _reference(x, w_t, b, operand_dtype=jnp.bfloat16)
    ref_f32 = _reference(x, w_t, b)
    assert out.shape == (3, 5, 200)
    assert jnp.allclose(out, ref_matched, atol=2e-3, rtol=2e-3)
    assert jnp.allclose(out, ref_f32, atol=5e-2, rtol=5e-2)

    # Case 3: forced multi-tile grid — several vocab tiles (online logsumexp)
    # and several row tiles.
    x, w_t, b = _make_inputs(k3, 2, 32, 128, 512)
    out = jax.block_until_ready(
        nlu_head_forward(x, w_t, b, tile_rows=16, tile_vocab=128))
    ref_matched = _reference(x, w_t, b, operand_dtype=jnp.bfloat16)
    assert out.shape == (2, 32, 512)
    assert jnp.allclose(out, ref_matched, atol=2e-3, rtol=2e-3)

    print("KERNEL_OK")
</pallas_src>

<mosaic_0001>
module attributes {stable_mosaic.version = 11 : i64} {
  func.func @_logits_lse_kernel(%arg0: i32, %arg1: i32, %arg2: memref<16x32xf32, #tpu.memory_space<vmem>>, %arg3: memref<32x128xf32, #tpu.memory_space<vmem>>, %arg4: memref<1x128xf32, #tpu.memory_space<vmem>>, %arg5: memref<16x128xf32, #tpu.memory_space<vmem>>, %arg6: memref<16x1xf32, #tpu.memory_space<vmem>>, %arg7: memref<16x1xf32, #tpu.memory_space<vmem>>, %arg8: memref<16x1xf32, #tpu.memory_space<vmem>>) attributes {dimension_semantics = [#tpu.dimension_semantics<parallel>, #tpu.dimension_semantics<arbitrary>], iteration_bounds = array<i64: 1, 1>, scalar_prefetch = 0 : i64, scratch_operands = 2 : i64, tpu.core_type = #tpu.core_type<tc>, window_params = [{transform_indices = @transform_0, window_bounds = array<i64: 16, 32>}, {transform_indices = @transform_1, window_bounds = array<i64: 32, 128>}, {transform_indices = @transform_2, window_bounds = array<i64: 1, 128>}, {transform_indices = @transform_3, window_bounds = array<i64: 16, 128>}, {transform_indices = @transform_4, window_bounds = array<i64: 16, 1>}]} {
    %c0_i32 = arith.constant 0 : i32
    %0 = arith.cmpi eq, %arg1, %c0_i32 : i32
    %1 = arith.extui %0 : i1 to i32
    %c0_i32_0 = arith.constant 0 : i32
    %2 = arith.cmpi ne, %1, %c0_i32_0 : i32
    scf.if %2 {
      %cst_20 = arith.constant 0xFF800000 : f32
      %29 = vector.broadcast %cst_20 : f32 to vector<16x1xf32>
      %c0_21 = arith.constant 0 : index
      %c0_22 = arith.constant 0 : index
      %30 = vector.load %arg7[%c0_21, %c0_22] : memref<16x1xf32, #tpu.memory_space<vmem>>, vector<16x1xf32>
      tpu.vector_store %arg7[%c0_21, %c0_22], %29 {strides = array<i32>} : memref<16x1xf32, #tpu.memory_space<vmem>>, vector<16x1xf32>,
      %cst_23 = arith.constant 0.000000e+00 : f32
      %31 = vector.broadcast %cst_23 : f32 to vector<16x1xf32>
      %c0_24 = arith.constant 0 : index
      %c0_25 = arith.constant 0 : index
      %32 = vector.load %arg8[%c0_24, %c0_25] : memref<16x1xf32, #tpu.memory_space<vmem>>, vector<16x1xf32>
      tpu.vector_store %arg8[%c0_24, %c0_25], %31 {strides = array<i32>} : memref<16x1xf32, #tpu.memory_space<vmem>>, vector<16x1xf32>,
    } else {
    }
    %c0 = arith.constant 0 : index
    %c0_1 = arith.constant 0 : index
    %3 = vector.load %arg2[%c0, %c0_1] : memref<16x32xf32, #tpu.memory_space<vmem>>, vector<16x32xf32>
    %c0_2 = arith.constant 0 : index
    %c0_3 = arith.constant 0 : index
    %4 = vector.load %arg3[%c0_2, %c0_3] : memref<32x128xf32, #tpu.memory_space<vmem>>, vector<32x128xf32>
    %cst = arith.constant dense<0.000000e+00> : vector<16x128xf32>
    %5 = tpu.matmul %3, %4, %cst {dimension_numbers = #tpu.dot_dimension_numbers<[1], [0], [0], [1], [0, 0, 1, 1], [], []>} : vector<16x32xf32>, vector<32x128xf32>, vector<16x128xf32> -> vector<16x128xf32>
    %c0_4 = arith.constant 0 : index
    %c0_5 = arith.constant 0 : index
    %6 = vector.load %arg4[%c0_4, %c0_5] : memref<1x128xf32, #tpu.memory_space<vmem>>, vector<1x128xf32>
    %7 = vector.broadcast %6 : vector<1x128xf32> to vector<16x128xf32>
    %8 = arith.addf %5, %7 : vector<16x128xf32>
    %c0_6 = arith.constant 0 : index
    %c0_7 = arith.constant 0 : index
    %9 = vector.load %arg7[%c0_6, %c0_7] : memref<16x1xf32, #tpu.memory_space<vmem>>, vector<16x1xf32>
    %cst_8 = arith.constant dense<0xFF800000> : vector<16xf32>
    %10 = vector.multi_reduction <maximumf>, %8, %cst_8 [1] : vector<16x128xf32> to vector<16xf32>
    %11 = vector.shape_cast %10 : vector<16xf32> to vector<16x1xf32>
    %12 = arith.maximumf %9, %11 : vector<16x1xf32>
    %13 = arith.subf %9, %12 : vector<16x1xf32>
    %14 = math.exp %13 : vector<16x1xf32>
    %c0_9 = arith.constant 0 : index
    %c0_10 = arith.constant 0 : index
    %15 = vector.load %arg8[%c0_9, %c0_10] : memref<16x1xf32, #tpu.memory_space<vmem>>, vector<16x1xf32>
    %16 = arith.mulf %14, %15 : vector<16x1xf32>
    %17 = vector.broadcast %12 : vector<16x1xf32> to vector<16x128xf32>
    %18 = arith.subf %8, %17 : vector<16x128xf32>
    %19 = math.exp %18 : vector<16x128xf32>
    %cst_11 = arith.constant dense<0.000000e+00> : vector<16xf32>
    %20 = vector.multi_reduction <add>, %19, %cst_11 [1] : vector<16x128xf32> to vector<16xf32>
    %21 = vector.shape_cast %20 : vector<16xf32> to vector<16x1xf32>
    %22 = arith.addf %16, %21 : vector<16x1xf32>
    %c0_12 = arith.constant 0 : index
    %c0_13 = arith.constant 0 : index
    %23 = vector.load %arg8[%c0_12, %c0_13] : memref<16x1xf32, #tpu.memory_space<vmem>>, vector<16x1xf32>
    tpu.vector_store %arg8[%c0_12, %c0_13], %22 {strides = array<i32>} : memref<16x1xf32, #tpu.memory_space<vmem>>, vector<16x1xf32>,
    %c0_14 = arith.constant 0 : index
    %c0_15 = arith.constant 0 : index
    %24 = vector.load %arg7[%c0_14, %c0_15] : memref<16x1xf32, #tpu.memory_space<vmem>>, vector<16x1xf32>
    tpu.vector_store %arg7[%c0_14, %c0_15], %12 {strides = array<i32>} : memref<16x1xf32, #tpu.memory_space<vmem>>, vector<16x1xf32>,
    %c0_16 = arith.constant 0 : index
    %c0_17 = arith.constant 0 : index
    %25 = vector.load %arg5[%c0_16, %c0_17] : memref<16x128xf32, #tpu.memory_space<vmem>>, vector<16x128xf32>
    tpu.vector_store %arg5[%c0_16, %c0_17], %8 {strides = array<i32>} : memref<16x128xf32, #tpu.memory_space<vmem>>, vector<16x128xf32>,
    %c0_i32_18 = arith.constant 0 : i32
    %26 = arith.cmpi eq, %arg1, %c0_i32_18 : i32
    %27 = arith.extui %26 : i1 to i32
    %c0_i32_19 = arith.constant 0 : i32
    %28 = arith.cmpi ne, %27, %c0_i32_19 : i32
    scf.if %28 {
      %c0_20 = arith.constant 0 : index
      %c0_21 = arith.constant 0 : index
      %29 = vector.load %arg7[%c0_20, %c0_21] : memref<16x1xf32, #tpu.memory_space<vmem>>, vector<16x1xf32>
      %c0_22 = arith.constant 0 : index
      %c0_23 = arith.constant 0 : index
      %30 = vector.load %arg8[%c0_22, %c0_23] : memref<16x1xf32, #tpu.memory_space<vmem>>, vector<16x1xf32>
      %31 = math.log %30 : vector<16x1xf32>
      %32 = arith.addf %29, %31 : vector<16x1xf32>
      %c0_24 = arith.constant 0 : index
      %c0_25 = arith.constant 0 : index
      %33 = vector.load %arg6[%c0_24, %c0_25] : memref<16x1xf32, #tpu.memory_space<vmem>>, vector<16x1xf32>
      tpu.vector_store %arg6[%c0_24, %c0_25], %32 {strides = array<i32>} : memref<16x1xf32, #tpu.memory_space<vmem>>, vector<16x1xf32>,
    } else {
    }
    return
  }
  func.func @transform_0(%arg0: i32, %arg1: i32) -> (i32, i32) {
    %c0_i32 = arith.constant 0 : i32
    %c0_i32_0 = arith.constant 0 : i32
    return %arg0, %c0_i32 : i32, i32
  }
  func.func @transform_1(%arg0: i32, %arg1: i32) -> (i32, i32) {
    %c0_i32 = arith.constant 0 : i32
    %c0_i32_0 = arith.constant 0 : i32
    return %c0_i32, %arg1 : i32, i32
  }
  func.func @transform_2(%arg0: i32, %arg1: i32) -> (i32, i32) {
    %c0_i32 = arith.constant 0 : i32
    %c0_i32_0 = arith.constant 0 : i32
    return %c0_i32, %arg1 : i32, i32
  }
  func.func @transform_3(%arg0: i32, %arg1: i32) -> (i32, i32) {
    %c0_i32 = arith.constant 0 : i32
    return %arg0, %arg1 : i32, i32
  }
  func.func @transform_4(%arg0: i32, %arg1: i32) -> (i32, i32) {
    %c0_i32 = arith.constant 0 : i32
    %c0_i32_0 = arith.constant 0 : i32
    return %arg0, %c0_i32 : i32, i32
  }
}

</mosaic_0001>

<bundles_post_ra>
// kernel: tpu_custom_call.1
= control target key start
LH: loop header
LB: loop body
LE: loop exit
PB: predicated region body
PF: predicated region fallthrough
CT: control target
= control target key end

     0   :  { %10 = vsyncpa [#allocation5], 0  ;;  %s452_s0 = inlined_call_operand.hbm [shape: f32[16,32], index: 0, kind: input, shape index: {}]   ;;  %s453_s1 = inlined_call_operand.hbm [shape: f32[32,128], index: 1, kind: input, shape index: {}]   ;;  %s454_s2 = inlined_call_operand.vmem [shape: f32[1,128], index: 2, kind: input, shape index: {}]   ;;  %s455_s3 = inlined_call_operand.hbm [shape: f32[16,128], index: 3, kind: output, shape index: {0}]   ;;  %s456_s4 = inlined_call_operand.vmem [shape: f32[16,1], index: 4, kind: output, shape index: {1}]  }
   0x1   :  { %11 = vsyncpa [#allocation8], 0 }
   0x2   :  { %12 = vsyncpa [#allocation6], 0  ;;  %s355_s15 = smov [#allocation4]   ;;  %s283_s19 = scalar_lea.hbm %s452_s0, 256 }
   0x3   :  { %s18_s16 = sshll.u32 %s355_s15, 4  ;;  %p284_p0 = scmp.ne.s32.totalorder %s452_s0, %s283_s19  ;;  %s19_s16 = int_to_ptr.vmem [resolvable:$true] %s18_s16 }
   0x4   :  { %p287_p1 = scmp.lt.u32.totalorder %s283_s19, %s452_s0 }
   0x6   :  { %p289_p2 = pnand %p287_p1, %p284_p0 }
   0x8   :  { %292 = shalt.err (!%p289_p2)
}
   0x9   :  { %s293_s24 = scalar_lea.vmem %s19_s16, 256  ;;  %p298_p4 = scmp.lt.s32.totalorder %s19_s16, %s19_s16 }
   0xa   :  { %p294_p3 = scmp.ne.s32.totalorder %s19_s16, %s293_s24  ;;  %p299_p5 = scmp.lt.s32.totalorder %s293_s24, %s293_s24 }
   0xc   :  { %p300_p6 = por %p299_p5, %p298_p4 }
   0xe   :  { %p301_p7 = pnand %p300_p6, %p294_p3 }
  0x10   :  { %304 = shalt.err (!%p301_p7)
}
  0x11   :  { %s356_s25 = smov 128   ;;  %s357_s26 = smov 8  }
  0x12   :  { %24 = dma.hbm_to_vmem [thread:$0]  %s452_s0, 256, %s19_s16, [#allocation5], %s356_s25, %s356_s25, %s357_s26  }
  0x13   :  { %s358_s29 = smov [#allocation7]   ;;  %s305_s7 = scalar_lea.hbm %s453_s1, 512 }
  0x14   :  { %s30_s30 = sshll.u32 %s358_s29, 4  ;;  %p306_p8 = scmp.ne.s32.totalorder %s453_s1, %s305_s7  ;;  %s31_s30 = int_to_ptr.vmem [resolvable:$true] %s30_s30 }
  0x15   :  { %p309_p9 = scmp.lt.u32.totalorder %s305_s7, %s453_s1 }
  0x17   :  { %p311_p10 = pnand %p309_p9, %p306_p8 }
  0x19   :  { %314 = shalt.err (!%p311_p10)
}
  0x1a   :  { %s315_s12 = scalar_lea.vmem %s31_s30, 512  ;;  %p320_p12 = scmp.lt.s32.totalorder %s31_s30, %s31_s30 }
  0x1b   :  { %p316_p11 = scmp.ne.s32.totalorder %s31_s30, %s315_s12  ;;  %p321_p13 = scmp.lt.s32.totalorder %s315_s12, %s315_s12 }
  0x1d   :  { %p322_p0 = por %p321_p13, %p320_p12 }
  0x1f   :  { %p323_p1 = pnand %p322_p0, %p316_p11 }
  0x21   :  { %326 = shalt.err (!%p323_p1)
}
  0x22   :  { %36 = dma.hbm_to_vmem [thread:$0]  %s453_s1, 512, %s31_s30, [#allocation8], %s356_s25, %s356_s25, %s357_s26  }
  0x23   :  { %349 = dma.done.wait [#allocation5], 256  }
  0x24   :  { %350 = vsyncadd [#allocation5], 4294967040 }
  0x25   :  { %351 = dma.done.wait [#allocation8], 512  }
  0x26   :  { %352 = vsyncadd [#allocation8], 4294966784  ;;  %vm67_vm0 = vcmask 261120   ;;  %v56_v0 = vld [vmem:[#allocation7] sm:$0xff]  ;;  %v57_v1 = vld [vmem:[#allocation7 + $0x8] sm:$0xff]  ;;  %vm49_vm1 = vcmask 7168  }
  0x27   :  { %v58_v2 = vld [vmem:[#allocation7 + $0x10] sm:$0xff]  ;;  %v253_v3 = vpack.c.bf16 %v57_v1, %v56_v0  ;;  %v59_v4 = vld [vmem:[#allocation7 + $0x18] sm:$0xff]  ;;  %v359_v8 = vmov -inf   ;;  %v360_v14 = vmov 0   ;;  %v361_v15 = vmov 0.0  }
  0x28   :  { %v54_v5 = vld [vmem:[#allocation4] sm:$0xff]  ;;  %v257_v6 = vpack.c.bf16 %v59_v4, %v58_v2  ;;  %v55_v7 = vld [vmem:[#allocation4 + $0x8] sm:$0xff]  ;;  %50 = vst.msk [vmem:[#allocation2] sm:$0xff] %vm49_vm1, %v359_v8  ;;  %51 = vst.msk [vmem:[#allocation2 + $0x8] sm:$0xff] %vm49_vm1, %v359_v8  ;;  %269 = vset.pattern.permute.xlu1 %v360_v14  ;;  %270 = vset.pattern.permute.xlu0 %v360_v14 }
  0x29   :  { %250 = vmatprep.mubr.msk.f32.mxu0 %vm67_vm0, %v54_v5  ;;  %254 = vmatprep.subr.bf16.mxu0 %v253_v3  ;;  %v233_v9 = vld [vmem:[%s454_s2] ss:$0 sm:$0xff]  ;;  %52 = vst.msk [vmem:[#allocation3] sm:$0xff] %vm49_vm1, %v361_v15  ;;  %53 = vst.msk [vmem:[#allocation3 + $0x8] sm:$0xff] %vm49_vm1, %v361_v15  ;;  %s362_s2 = smov [#allocation9]  }
  0x2a   :  { %256 = vmatpush3.bf16.msra.mxu0 %v253_v3  ;;  %s216_s15 = sshll.u32 %s362_s2, 4  ;;  %s217_s15 = int_to_ptr.vmem [resolvable:$true] %s216_s15 }
  0x2b   :  { %258 = vmatprep.subr.bf16.mxu0 %v257_v6  ;;  %s327_s16 = scalar_lea.vmem %s217_s15, 256  ;;  %p332_p3 = scmp.lt.s32.totalorder %s217_s15, %s217_s15 }
  0x2c   :  { %p328_p2 = scmp.ne.s32.totalorder %s217_s15, %s327_s16  ;;  %p333_p4 = scmp.lt.s32.totalorder %s327_s16, %s327_s16 }
  0x2e   :  { %260 = vmatpush3.bf16.msra.mxu0 %v257_v6  ;;  %p334_p5 = por %p333_p4, %p332_p3 }
  0x2f   :  { %v149_v16 = vld [vmem:[#allocation2] sm:$0xff]  ;;  %v150_v19 = vld [vmem:[#allocation2 + $0x8] sm:$0xff] }
  0x30   :  { %p335_p6 = pnand %p334_p5, %p328_p2 }
  0x31   :  { %251 = vmatmul.mubr.msk.f32.vlgmr.msra.gmra.mrb[0].mxu0 %vm67_vm0, %v55_v7 }
 0x104   :  { %v252_v10 = vpop.f32.mrb[0].mxu0 }
 0x105   :  { %v146_v11 = vadd.f32 %v252_v10, %v233_v9  ;;  %v140_v12 = vpop.f32.mrb[1].mxu0 }
 0x106   :  { %v141_v13 = vadd.f32 %v233_v9, %v140_v12 }
 0x107   :  { %195 = vst [vmem:[#allocation9 + $0x8] sm:$0xff] %v146_v11 }
 0x108   :  { %194 = vst [vmem:[#allocation9] sm:$0xff] %v141_v13  ;;  %151 = vmax.xlane.f32.xlu0 %v141_v13 }
 0x10c   :  { %153 = vmax.xlane.f32.xlu0 %v146_v11 }
 0x195   :  { %v152_v17 = vpop.xlane.xlu0 %151 }
 0x196   :  { %v155_v18 = vmax.f32 %v149_v16, %v152_v17 }
 0x198   :  { %v157_v20 = vsub.f32 %v149_v16, %v155_v18  ;;  %192 = vst.msk [vmem:[#allocation2] sm:$0xff] %vm49_vm1, %v155_v18  ;;  %169 = vperm.xlu1 %269, %v155_v18  }
 0x199   :  { %v154_v21 = vpop.xlane.xlu0 %153 }
 0x19a   :  { %v156_v22 = vmax.f32 %v150_v19, %v154_v21 }
 0x19c   :  { %v158_v23 = vsub.f32 %v150_v19, %v156_v22  ;;  %193 = vst.msk [vmem:[#allocation2 + $0x8] sm:$0xff] %vm49_vm1, %v156_v22  ;;  %174 = vperm.xlu1 %269, %v156_v22  }
 0x217   :  { %v170_v24 = vpop.permute.xlu1 %169 }
 0x218   :  { %v177_v25 = vsub.f32 %v141_v13, %v170_v24 }
 0x21a   :  { %v179_v26 = vmul.f32 1.442695, %v177_v25 }
 0x21b   :  { %v175_v27 = vpop.permute.xlu1 %174 }
 0x21c   :  { %271 = vpow2.f32 %v179_v26  ;;  %v178_v28 = vsub.f32 %v146_v11, %v175_v27 }
 0x21e   :  { %v181_v29 = vmul.f32 1.442695, %v178_v28 }
 0x220   :  { %273 = vpow2.f32 %v181_v29 }
 0x226   :  { %v272_v30 = vpop.eup %271 }
 0x227   :  { %183 = vadd.xlane.f32.xlu0 %v272_v30 }
 0x22a   :  { %v274_v31 = vpop.eup %273 }
 0x22b   :  { %185 = vadd.xlane.f32.xlu1 %v274_v31 }
 0x22c   :  { %338 = shalt.err (!%p335_p6)
}
 0x22d   :  { %s339_s19 = scalar_lea.hbm %s455_s3, 256 }
 0x22e   :  { %p340_p7 = scmp.ne.s32.totalorder %s455_s3, %s339_s19  ;;  %p343_p8 = scmp.lt.u32.totalorder %s339_s19, %s455_s3 }
 0x230   :  { %p345_p9 = pnand %p343_p8, %p340_p7 }
 0x232   :  { %348 = shalt.err (!%p345_p9)
}
 0x233   :  { %222 = dma.vmem_to_hbm [thread:$0]  %s217_s15, 256, %s455_s3, [#allocation6], %s356_s25, %s356_s25, %s357_s26   ;;  %v159_v32 = vmul.f32 1.442695, %v157_v20  ;;  %v161_v33 = vmul.f32 1.442695, %v158_v23 }
 0x234   :  { %v163_v35 = vld [vmem:[#allocation3] sm:$0xff]  ;;  %v164_v39 = vld [vmem:[#allocation3 + $0x8] sm:$0xff]  ;;  %v199_v48 = vld [vmem:[#allocation2] sm:$0xff] }
 0x235   :  { %275 = vpow2.f32 %v159_v32  ;;  %v200_v52 = vld [vmem:[#allocation2 + $0x8] sm:$0xff] }
 0x236   :  { %277 = vpow2.f32 %v161_v33 }
 0x23f   :  { %v276_v34 = vpop.eup %275 }
 0x240   :  { %v165_v36 = vmul.f32 %v276_v34, %v163_v35  ;;  %v278_v37 = vpop.eup %277 }
 0x241   :  { %v166_v41 = vmul.f32 %v278_v37, %v164_v39 }
 0x2b4   :  { %v184_v38 = vpop.xlane.xlu0 %183 }
 0x2b5   :  { %v187_v40 = vadd.f32 %v184_v38, %v165_v36 }
 0x2b7   :  { %190 = vst.msk [vmem:[#allocation3] sm:$0xff] %vm49_vm1, %v187_v40 }
 0x2b8   :  { %v186_v42 = vpop.xlane.xlu1 %185 }
 0x2b9   :  { %v188_v43 = vadd.f32 %v186_v42, %v166_v41 }
 0x2bb   :  { %191 = vst.msk [vmem:[#allocation3 + $0x8] sm:$0xff] %vm49_vm1, %v188_v43 }
 0x2be   :  { %v201_v44 = vld [vmem:[#allocation3] sm:$0xff] }
 0x2bf   :  { %279 = vlog2.f32 %v201_v44 }
 0x2c2   :  { %v202_v45 = vld [vmem:[#allocation3 + $0x8] sm:$0xff] }
 0x2c3   :  { %281 = vlog2.f32 %v202_v45 }
 0x2c9   :  { %v280_v46 = vpop.eup %279 }
 0x2ca   :  { %v204_v47 = vmul.f32 0.6931472, %v280_v46 }
 0x2cc   :  { %v207_v49 = vadd.f32 %v204_v47, %v199_v48 }
 0x2cd   :  { %v282_v50 = vpop.eup %281 }
 0x2ce   :  { %209 = vst.msk [vmem:[%s456_s4] sm:$0xff] %vm49_vm1, %v207_v49  ;;  %v206_v51 = vmul.f32 0.6931472, %v282_v50 }
 0x2d0   :  { %v208_v53 = vadd.f32 %v206_v51, %v200_v52 }
 0x2d2   :  { %210 = vst.msk [vmem:[%s456_s4 + $0x8] sm:$0xff] %vm49_vm1, %v208_v53 }
 0x2d3   :  { %353 = dma.done.wait [#allocation6], 256  }
 0x2d4   :  { %354 = vsyncadd [#allocation6], 4294967040 }
 0x2d5   :  { %230 = vsyncpa [#allocation5], 1 }
 0x2d6   :  { %231 = vsyncpa [#allocation8], 1 }
 0x2d7   :  { %232 = vsyncpa [#allocation6], 1 }

</bundles_post_ra>
